<compile_context>
chip_gen: v5e
topology: v5e:2x2
jax: 0.10.0
libtpu: 0.0.40
codegen_flags: <defaults>
</compile_context>

<pallas_src>
import functools

import jax
import jax.numpy as jnp
from jax.experimental import pallas as pl
from jax.experimental.pallas import tpu as pltpu


def gkat_gat_kernel(x_ref, adj_ref, w_ref, adw_ref, asr_ref, bd_ref, seg_ref,
                    exp_ref, bias_ref, out_ref, *, heads, feat, n):
    f32, bf16 = jnp.float32, jnp.bfloat16
    hidden = heads * feat

    # h = x @ W  (bf16 operands, f32 accumulation on the MXU).
    h = jnp.dot(x_ref[...], w_ref[...], preferred_element_type=f32)    # [n, hidden]
    h_bf = h.astype(bf16)

    # Destination-side scores, lane-dense in [n, heads*n] from the start via a
    # single MXU matmul (column hd*n+j of adw holds a_dst[hd,:] in head hd's
    # feature rows).
    e = jnp.dot(h_bf, adw_ref[...], preferred_element_type=f32)        # [n, heads*n]

    # Source-side scores: one NT matmul puts nodes on lanes, then a single
    # 8-row -> 128-lane relayout broadcast over sublanes.
    s_src = jnp.einsum("hc,nc->hn", asr_ref[...], h_bf,
                       preferred_element_type=f32)                     # [heads, n]
    src_row = jnp.concatenate(
        [s_src[hd:hd + 1, :] for hd in range(heads)], axis=-1)         # [1, heads*n]
    e = e + src_row

    # LeakyReLU(0.2) as mul + max.
    e = jnp.maximum(e, 0.2 * e)

    # Additive adjacency mask: int8 0/1 [n, n] expanded to 0/-1e30 and tiled
    # across the head segments in-kernel (VPU filler, not 8x DMA).
    neg = (adj_ref[...].astype(f32) - 1.0) * 1e30                      # [n, n]
    e = e + jnp.concatenate([neg] * heads, axis=-1)                    # [n, heads*n]

    # Softmax over sources per (dst row, head). A single row-wide max is a
    # valid stabiliser for every head segment (per-row constants cancel);
    # self loops keep it finite. Masked lanes underflow to exactly 0.
    m = jnp.max(e, axis=-1, keepdims=True)
    p = jnp.exp(e - m)                                                 # f32
    p_bf = p.astype(bf16)

    # Fused aggregation + per-head denominators: ONE
    # [n, heads*n] x [heads*n, hidden+heads] MXU matmul (K = heads*n = 128).
    tiled_h = jnp.concatenate([h_bf] * heads, axis=0)                  # [heads*n, hidden]
    h_bd_aug = jnp.concatenate([bd_ref[...] * tiled_h, seg_ref[...]], axis=-1)
    agg = jnp.dot(p_bf, h_bd_aug, preferred_element_type=f32)          # [n, hidden+heads]
    num = agg[:, :hidden]
    # Clamp: even if a whole head segment underflowed, no inf/NaN (that head
    # would output 0 instead of garbage).
    denom = jnp.maximum(agg[:, hidden:], 1e-20)                        # [n, heads]

    # Reciprocal on the EUP + one Newton step; per-head scale expanded to
    # per-feature lanes with a tiny f32 matmul, applied AFTER aggregation.
    r = pl.reciprocal(denom, approx=True)
    inv = r * (2.0 - denom * r)
    scale = jnp.dot(inv, exp_ref[...], preferred_element_type=f32)     # [n, hidden]

    out_ref[...] = num * scale + bias_ref[...]


# ----------------------------- host-side helpers -----------------------------

def _attn_rows(att, heads, feat):
    """[heads, feat] -> [heads, heads*feat]; row hd holds att[hd,:] in head hd's columns."""
    hidden = heads * feat
    vals = att.reshape(1, hidden)
    col_head = (jnp.arange(hidden, dtype=jnp.int32) // feat)[None, :]
    head_id = jnp.arange(heads, dtype=jnp.int32)[:, None]
    return jnp.where(head_id == col_head, vals, 0.0)


def _dst_wide(att_dst, heads, feat, n):
    """[heads, feat] -> [heads*feat, heads*n]; column hd*n+j holds a_dst[hd,:]
    in head hd's feature rows, so h @ adw yields dst scores lane-stacked."""
    hidden = heads * feat
    hn = heads * n
    vals = att_dst.reshape(hidden, 1)
    row_head = (jnp.arange(hidden, dtype=jnp.int32) // feat)[:, None]
    col_head = (jnp.arange(hn, dtype=jnp.int32) // n)[None, :]
    return jnp.where(row_head == col_head, vals, 0.0)


def _static_selectors(heads, feat, n):
    hidden = heads * feat
    hn = heads * n
    row_head = (jnp.arange(hn, dtype=jnp.int32) // n)[:, None]
    bd = row_head == (jnp.arange(hidden, dtype=jnp.int32) // feat)[None, :]
    seg = row_head == jnp.arange(heads, dtype=jnp.int32)[None, :]
    expand = (jnp.arange(heads, dtype=jnp.int32)[:, None]
              == (jnp.arange(hidden, dtype=jnp.int32) // feat)[None, :])
    return (bd.astype(jnp.bfloat16), seg.astype(jnp.bfloat16),
            expand.astype(jnp.float32))


def build_adj(edge_index, num_nodes):
    """Dense 0/1 adjacency [N, N] int8: edge j->i => adj[i,j]=1, plus self
    loops (PyG add_self_loops=True, also subsumes the module's empty-edge
    fallback). Out-of-range indices dropped. Scatter-free (one-hot matmul)."""
    src = edge_index[0].astype(jnp.int32)
    dst = edge_index[1].astype(jnp.int32)
    valid = (src >= 0) & (src < num_nodes) & (dst >= 0) & (dst < num_nodes)
    ids = jnp.arange(num_nodes, dtype=jnp.int32)
    src_oh = ((src[:, None] == ids[None, :]) & valid[:, None]).astype(jnp.float32)
    dst_oh = ((dst[:, None] == ids[None, :]) & valid[:, None]).astype(jnp.float32)
    adj = jnp.dot(dst_oh.T, src_oh) > 0.0
    adj = adj | jnp.eye(num_nodes, dtype=bool)
    # TODO(synk): dense adjacency dedups duplicate edges; PyG's edge-list
    # softmax counts each duplicate edge separately.
    return adj.astype(jnp.int8)


def simple_gkat_forward_batched(x, edge_index, params, heads):
    """x: [B, N, C_in], edge_index: [B, 2, E]  ->  [B, N, heads*feat]."""
    b, n, c_in = x.shape
    hidden = params["w"].shape[1]
    feat = hidden // heads
    hn = heads * n

    adj = jax.vmap(lambda ei: build_adj(ei, n))(edge_index)            # [B, N, N] int8
    xb = x.astype(jnp.bfloat16)
    w = params["w"].astype(jnp.bfloat16)
    adw = _dst_wide(params["att_dst"], heads, feat, n).astype(jnp.bfloat16)
    asr = _attn_rows(params["att_src"], heads, feat).astype(jnp.bfloat16)
    bd, seg, expand = _static_selectors(heads, feat, n)
    bias = params["bias"].reshape(1, hidden).astype(jnp.float32)

    kernel = functools.partial(gkat_gat_kernel, heads=heads, feat=feat, n=n)

    flops = b * (2 * n * c_in * hidden            # x @ W
                 + 2 * n * hidden * hn            # dst scores
                 + 2 * heads * hidden * n         # src scores
                 + 2 * n * hn * (hidden + heads)  # aggregation + denominators
                 + 2 * n * heads * hidden)        # per-head scale expansion
    operands = (xb, adj, w, adw, asr, bd, seg, expand, bias)
    bytes_accessed = int(sum(int(o.size) * o.dtype.itemsize for o in operands)
                         + b * n * hidden * 4)
    cost = pl.CostEstimate(flops=int(flops), transcendentals=int(b * n * hn),
                           bytes_accessed=bytes_accessed)

    per_graph_specs = [
        pl.BlockSpec((None, n, c_in), lambda i: (i, 0, 0)),   # x      (bf16)
        pl.BlockSpec((None, n, n), lambda i: (i, 0, 0)),      # adj    (int8)
    ]
    shared_specs = [
        pl.BlockSpec((c_in, hidden), lambda i: (0, 0)),       # W
        pl.BlockSpec((hidden, hn), lambda i: (0, 0)),         # A_dst_wide
        pl.BlockSpec((heads, hidden), lambda i: (0, 0)),      # A_src_rows
        pl.BlockSpec((hn, hidden), lambda i: (0, 0)),         # block-diag mask
        pl.BlockSpec((hn, heads), lambda i: (0, 0)),          # seg
        pl.BlockSpec((heads, hidden), lambda i: (0, 0)),      # expand
        pl.BlockSpec((1, hidden), lambda i: (0, 0)),          # bias
    ]
    # TODO(synk): for large N, tile dst rows and switch to per-head
    # [tile, N] x [N, feat] aggregation (drop the block-diagonal K=heads*N
    # operand, which replicates h), sizing the working set against 64 MiB on
    # v7x / the 16 MiB scoped default on v5e (or raise vmem_limit_bytes).
    return pl.pallas_call(
        kernel,
        out_shape=jax.ShapeDtypeStruct((b, n, hidden), jnp.float32),
        grid=(b,),
        in_specs=per_graph_specs + shared_specs,
        out_specs=pl.BlockSpec((None, n, hidden), lambda i: (i, 0, 0)),
        compiler_params=pltpu.CompilerParams(dimension_semantics=("parallel",)),
        cost_estimate=cost,
    )(xb, adj, w, adw, asr, bd, seg, expand, bias)


def simple_gkat_forward(x, edge_index, params, heads):
    """Module-equivalent single-graph forward: x [N, C_in], edge_index [2, E]."""
    return simple_gkat_forward_batched(x[None], edge_index[None], params, heads)[0]


def ref_forward(x, edge_index, params, heads):
    """Pure-JAX f32 reference (independent formulation: scatter adjacency,
    per-head loop, division-based softmax)."""
    n = x.shape[0]
    hidden = params["w"].shape[1]
    feat = hidden // heads
    src, dst = edge_index[0], edge_index[1]
    valid = (src >= 0) & (src < n) & (dst >= 0) & (dst < n)
    adj = jnp.zeros((n, n), jnp.float32)
    adj = adj.at[jnp.where(valid, dst, 0), jnp.where(valid, src, 0)].max(
        valid.astype(jnp.float32))
    adj = jnp.maximum(adj, jnp.eye(n, dtype=jnp.float32))
    h = x.astype(jnp.float32) @ params["w"]
    outs = []
    for hd in range(heads):
        hh = h[:, hd * feat:(hd + 1) * feat]
        s_src = jnp.sum(hh * params["att_src"][hd], axis=-1, keepdims=True)
        s_dst = jnp.sum(hh * params["att_dst"][hd], axis=-1, keepdims=True)
        e = s_dst + s_src.T
        e = jnp.where(e > 0, e, 0.2 * e)
        e = jnp.where(adj > 0, e, -1e30)
        m = jnp.max(e, axis=-1, keepdims=True)
        p = jnp.where(adj > 0, jnp.exp(e - m), 0.0)
        att = p / jnp.sum(p, axis=-1, keepdims=True)
        outs.append(att @ hh)
    return jnp.concatenate(outs, axis=-1) + params["bias"].reshape(1, hidden)


if __name__ == "__main__":
    B, N, C_IN, OUT_CHANNELS, HEADS, E = 4, 16, 8, 32, 8, 40
    FEAT = OUT_CHANNELS // HEADS

    key = jax.random.PRNGKey(0)
    kx, ke, kw, ks, kd, kb = jax.random.split(key, 6)

    x = jax.random.normal(kx, (B, N, C_IN), dtype=jnp.float32)
    # random edges; include some out-of-range indices to exercise the filter
    edge_index = jax.random.randint(ke, (B, 2, E), 0, N + 3, dtype=jnp.int32)

    params = {
        "w": 0.1 * jax.random.normal(kw, (C_IN, OUT_CHANNELS), jnp.float32),
        "att_src": 0.1 * jax.random.normal(ks, (HEADS, FEAT), jnp.float32),
        "att_dst": 0.1 * jax.random.normal(kd, (HEADS, FEAT), jnp.float32),
        "bias": 0.1 * jax.random.normal(kb, (OUT_CHANNELS,), jnp.float32),
    }
    # TODO(synk): attention dropout (p=0.6) is training-time only; this forward
    # is implemented in eval/inference mode (dropout disabled).

    out = simple_gkat_forward_batched(x, edge_index, params, HEADS)
    out = jax.block_until_ready(out)
    assert out.shape == (B, N, OUT_CHANNELS)

    # bf16 MXU operands with f32 accumulation vs. a full-f32 reference
    # -> tolerance loosened from 1e-3 to 1e-2 per review guidance.
    for b in range(B):
        ref = ref_forward(x[b], edge_index[b], params, HEADS)
        assert jnp.allclose(out[b], ref, atol=1e-2, rtol=1e-2), f"mismatch graph {b}"

    # Module-equivalent single-graph API (batch of one) — determinism check.
    out0 = simple_gkat_forward(x[0], edge_index[0], params, HEADS)
    out0 = jax.block_until_ready(out0)
    assert jnp.allclose(out0, out[0], atol=1e-5, rtol=1e-5)

    print("KERNEL_OK")
</pallas_src>

<mosaic_0001>
module attributes {stable_mosaic.version = 11 : i64} {
  func.func @gkat_gat_kernel(%arg0: i32, %arg1: memref<1x16x8xbf16, #tpu.memory_space<vmem>>, %arg2: memref<1x16x16xi8, #tpu.memory_space<vmem>>, %arg3: memref<8x32xbf16, #tpu.memory_space<vmem>>, %arg4: memref<32x128xbf16, #tpu.memory_space<vmem>>, %arg5: memref<8x32xbf16, #tpu.memory_space<vmem>>, %arg6: memref<128x32xbf16, #tpu.memory_space<vmem>>, %arg7: memref<128x8xbf16, #tpu.memory_space<vmem>>, %arg8: memref<8x32xf32, #tpu.memory_space<vmem>>, %arg9: memref<1x32xf32, #tpu.memory_space<vmem>>, %arg10: memref<1x16x32xf32, #tpu.memory_space<vmem>>) attributes {dimension_semantics = [#tpu.dimension_semantics<parallel>], iteration_bounds = array<i64: 4>, scalar_prefetch = 0 : i64, scratch_operands = 0 : i64, tpu.core_type = #tpu.core_type<tc>, window_params = [{transform_indices = @transform_0, window_bounds = array<i64: 1, 16, 8>}, {transform_indices = @transform_1, window_bounds = array<i64: 1, 16, 16>}, {pipeline_mode = #tpu.pipeline_mode<synchronous>, transform_indices = @transform_2, window_bounds = array<i64: 8, 32>}, {pipeline_mode = #tpu.pipeline_mode<synchronous>, transform_indices = @transform_3, window_bounds = array<i64: 32, 128>}, {pipeline_mode = #tpu.pipeline_mode<synchronous>, transform_indices = @transform_4, window_bounds = array<i64: 8, 32>}, {pipeline_mode = #tpu.pipeline_mode<synchronous>, transform_indices = @transform_5, window_bounds = array<i64: 128, 32>}, {pipeline_mode = #tpu.pipeline_mode<synchronous>, transform_indices = @transform_6, window_bounds = array<i64: 128, 8>}, {pipeline_mode = #tpu.pipeline_mode<synchronous>, transform_indices = @transform_7, window_bounds = array<i64: 8, 32>}, {pipeline_mode = #tpu.pipeline_mode<synchronous>, transform_indices = @transform_8, window_bounds = array<i64: 1, 32>}, {transform_indices = @transform_9, window_bounds = array<i64: 1, 16, 32>}]} {
    %c0 = arith.constant 0 : index
    %c0_0 = arith.constant 0 : index
    %c0_1 = arith.constant 0 : index
    %0 = vector.load %arg1[%c0, %c0_0, %c0_1] : memref<1x16x8xbf16, #tpu.memory_space<vmem>>, vector<1x16x8xbf16>
    %1 = vector.shape_cast %0 : vector<1x16x8xbf16> to vector<16x8xbf16>
    %c0_2 = arith.constant 0 : index
    %c0_3 = arith.constant 0 : index
    %2 = vector.load %arg3[%c0_2, %c0_3] : memref<8x32xbf16, #tpu.memory_space<vmem>>, vector<8x32xbf16>
    %cst = arith.constant dense<0.000000e+00> : vector<16x32xf32>
    %3 = tpu.matmul %1, %2, %cst {dimension_numbers = #tpu.dot_dimension_numbers<[1], [0], [0], [1], [0, 0, 1, 1], [], []>} : vector<16x8xbf16>, vector<8x32xbf16>, vector<16x32xf32> -> vector<16x32xf32>
    %4 = arith.truncf %3 : vector<16x32xf32> to vector<16x32xbf16>
    %c0_4 = arith.constant 0 : index
    %c0_5 = arith.constant 0 : index
    %5 = vector.load %arg4[%c0_4, %c0_5] : memref<32x128xbf16, #tpu.memory_space<vmem>>, vector<32x128xbf16>
    %cst_6 = arith.constant dense<0.000000e+00> : vector<16x128xf32>
    %6 = tpu.matmul %4, %5, %cst_6 {dimension_numbers = #tpu.dot_dimension_numbers<[1], [0], [0], [1], [0, 0, 1, 1], [], []>} : vector<16x32xbf16>, vector<32x128xbf16>, vector<16x128xf32> -> vector<16x128xf32>
    %c0_7 = arith.constant 0 : index
    %c0_8 = arith.constant 0 : index
    %7 = vector.load %arg5[%c0_7, %c0_8] : memref<8x32xbf16, #tpu.memory_space<vmem>>, vector<8x32xbf16>
    "tpu.trace_start"() <{level = 10 : i32, message = "hc,nc->hn"}> : () -> ()
    %cst_9 = arith.constant dense<0.000000e+00> : vector<8x16xf32>
    %8 = tpu.matmul %7, %4, %cst_9 {dimension_numbers = #tpu.dot_dimension_numbers<[1], [1], [0], [0], [0, 0, 1, 0], [], []>} : vector<8x32xbf16>, vector<16x32xbf16>, vector<8x16xf32> -> vector<8x16xf32>
    "tpu.trace_stop"() : () -> ()
    %9 = vector.extract_strided_slice %8 {offsets = [0, 0], sizes = [1, 16], strides = [1, 1]} : vector<8x16xf32> to vector<1x16xf32>
    %10 = vector.extract_strided_slice %8 {offsets = [1, 0], sizes = [1, 16], strides = [1, 1]} : vector<8x16xf32> to vector<1x16xf32>
    %11 = vector.extract_strided_slice %8 {offsets = [2, 0], sizes = [1, 16], strides = [1, 1]} : vector<8x16xf32> to vector<1x16xf32>
    %12 = vector.extract_strided_slice %8 {offsets = [3, 0], sizes = [1, 16], strides = [1, 1]} : vector<8x16xf32> to vector<1x16xf32>
    %13 = vector.extract_strided_slice %8 {offsets = [4, 0], sizes = [1, 16], strides = [1, 1]} : vector<8x16xf32> to vector<1x16xf32>
    %14 = vector.extract_strided_slice %8 {offsets = [5, 0], sizes = [1, 16], strides = [1, 1]} : vector<8x16xf32> to vector<1x16xf32>
    %15 = vector.extract_strided_slice %8 {offsets = [6, 0], sizes = [1, 16], strides = [1, 1]} : vector<8x16xf32> to vector<1x16xf32>
    %16 = vector.extract_strided_slice %8 {offsets = [7, 0], sizes = [1, 16], strides = [1, 1]} : vector<8x16xf32> to vector<1x16xf32>
    %17 = tpu.concatenate %9, %10, %11, %12, %13, %14, %15, %16 in 1 : vector<1x16xf32>, vector<1x16xf32>, vector<1x16xf32>, vector<1x16xf32>, vector<1x16xf32>, vector<1x16xf32>, vector<1x16xf32>, vector<1x16xf32> -> vector<1x128xf32>
    %18 = vector.broadcast %17 : vector<1x128xf32> to vector<16x128xf32>
    %19 = arith.addf %6, %18 : vector<16x128xf32>
    %cst_10 = arith.constant 2.000000e-01 : f32
    %20 = vector.broadcast %cst_10 : f32 to vector<16x128xf32>
    %21 = arith.mulf %20, %19 : vector<16x128xf32>
    %22 = arith.maximumf %19, %21 : vector<16x128xf32>
    %c0_11 = arith.constant 0 : index
    %c0_12 = arith.constant 0 : index
    %c0_13 = arith.constant 0 : index
    %23 = vector.load %arg2[%c0_11, %c0_12, %c0_13] : memref<1x16x16xi8, #tpu.memory_space<vmem>>, vector<1x16x16xi8>
    %24 = vector.shape_cast %23 : vector<1x16x16xi8> to vector<16x16xi8>
    %25 = arith.sitofp %24 : vector<16x16xi8> to vector<16x16xf32>
    %cst_14 = arith.constant 1.000000e+00 : f32
    %26 = vector.broadcast %cst_14 : f32 to vector<16x16xf32>
    %27 = arith.subf %25, %26 : vector<16x16xf32>
    %cst_15 = arith.constant 1.000000e+30 : f32
    %28 = vector.broadcast %cst_15 : f32 to vector<16x16xf32>
    %29 = arith.mulf %27, %28 : vector<16x16xf32>
    %30 = tpu.concatenate %29, %29, %29, %29, %29, %29, %29, %29 in 1 : vector<16x16xf32>, vector<16x16xf32>, vector<16x16xf32>, vector<16x16xf32>, vector<16x16xf32>, vector<16x16xf32>, vector<16x16xf32>, vector<16x16xf32> -> vector<16x128xf32>
    %31 = arith.addf %22, %30 : vector<16x128xf32>
    %cst_16 = arith.constant dense<0xFF800000> : vector<16xf32>
    %32 = vector.multi_reduction <maximumf>, %31, %cst_16 [1] : vector<16x128xf32> to vector<16xf32>
    %33 = vector.shape_cast %32 : vector<16xf32> to vector<16x1xf32>
    %34 = vector.broadcast %33 : vector<16x1xf32> to vector<16x128xf32>
    %35 = arith.subf %31, %34 : vector<16x128xf32>
    %36 = math.exp %35 : vector<16x128xf32>
    %37 = arith.truncf %36 : vector<16x128xf32> to vector<16x128xbf16>
    %38 = tpu.concatenate %4, %4, %4, %4, %4, %4, %4, %4 in 0 : vector<16x32xbf16>, vector<16x32xbf16>, vector<16x32xbf16>, vector<16x32xbf16>, vector<16x32xbf16>, vector<16x32xbf16>, vector<16x32xbf16>, vector<16x32xbf16> -> vector<128x32xbf16>
    %c0_17 = arith.constant 0 : index
    %c0_18 = arith.constant 0 : index
    %39 = vector.load %arg6[%c0_17, %c0_18] : memref<128x32xbf16, #tpu.memory_space<vmem>>, vector<128x32xbf16>
    %40 = arith.mulf %39, %38 : vector<128x32xbf16>
    %c0_19 = arith.constant 0 : index
    %c0_20 = arith.constant 0 : index
    %41 = vector.load %arg7[%c0_19, %c0_20] : memref<128x8xbf16, #tpu.memory_space<vmem>>, vector<128x8xbf16>
    %42 = tpu.concatenate %40, %41 in 1 : vector<128x32xbf16>, vector<128x8xbf16> -> vector<128x40xbf16>
    %cst_21 = arith.constant dense<0.000000e+00> : vector<16x40xf32>
    %43 = tpu.matmul %37, %42, %cst_21 {dimension_numbers = #tpu.dot_dimension_numbers<[1], [0], [0], [1], [0, 0, 1, 1], [], []>} : vector<16x128xbf16>, vector<128x40xbf16>, vector<16x40xf32> -> vector<16x40xf32>
    %44 = vector.extract_strided_slice %43 {offsets = [0, 0], sizes = [16, 32], strides = [1, 1]} : vector<16x40xf32> to vector<16x32xf32>
    %45 = vector.extract_strided_slice %43 {offsets = [0, 32], sizes = [16, 8], strides = [1, 1]} : vector<16x40xf32> to vector<16x8xf32>
    %cst_22 = arith.constant 9.99999968E-21 : f32
    %46 = vector.broadcast %cst_22 : f32 to vector<16x8xf32>
    %47 = arith.maximumf %45, %46 : vector<16x8xf32>
    %48 = tpu.reciprocal %47 {approx = true} : vector<16x8xf32> -> vector<16x8xf32>
    %49 = arith.mulf %47, %48 : vector<16x8xf32>
    %cst_23 = arith.constant 2.000000e+00 : f32
    %50 = vector.broadcast %cst_23 : f32 to vector<16x8xf32>
    %51 = arith.subf %50, %49 : vector<16x8xf32>
    %52 = arith.mulf %48, %51 : vector<16x8xf32>
    %c0_24 = arith.constant 0 : index
    %c0_25 = arith.constant 0 : index
    %53 = vector.load %arg8[%c0_24, %c0_25] : memref<8x32xf32, #tpu.memory_space<vmem>>, vector<8x32xf32>
    %cst_26 = arith.constant dense<0.000000e+00> : vector<16x32xf32>
    %54 = tpu.matmul %52, %53, %cst_26 {dimension_numbers = #tpu.dot_dimension_numbers<[1], [0], [0], [1], [0, 0, 1, 1], [], []>} : vector<16x8xf32>, vector<8x32xf32>, vector<16x32xf32> -> vector<16x32xf32>
    %55 = arith.mulf %44, %54 : vector<16x32xf32>
    %c0_27 = arith.constant 0 : index
    %c0_28 = arith.constant 0 : index
    %56 = vector.load %arg9[%c0_27, %c0_28] : memref<1x32xf32, #tpu.memory_space<vmem>>, vector<1x32xf32>
    %57 = vector.broadcast %56 : vector<1x32xf32> to vector<16x32xf32>
    %58 = arith.addf %55, %57 : vector<16x32xf32>
    %c0_29 = arith.constant 0 : index
    %c0_30 = arith.constant 0 : index
    %c0_31 = arith.constant 0 : index
    %59 = vector.load %arg10[%c0_29, %c0_30, %c0_31] : memref<1x16x32xf32, #tpu.memory_space<vmem>>, vector<1x16x32xf32>
    %60 = vector.shape_cast %59 : vector<1x16x32xf32> to vector<16x32xf32>
    %61 = vector.shape_cast %58 : vector<16x32xf32> to vector<1x16x32xf32>
    tpu.vector_store %arg10[%c0_29, %c0_30, %c0_31], %61 {strides = array<i32>} : memref<1x16x32xf32, #tpu.memory_space<vmem>>, vector<1x16x32xf32>,
    return
  }
  func.func @transform_0(%arg0: i32) -> (i32, i32, i32) {
    %c0_i32 = arith.constant 0 : i32
    %c0_i32_0 = arith.constant 0 : i32
    %c0_i32_1 = arith.constant 0 : i32
    return %arg0, %c0_i32, %c0_i32_0 : i32, i32, i32
  }
  func.func @transform_1(%arg0: i32) -> (i32, i32, i32) {
    %c0_i32 = arith.constant 0 : i32
    %c0_i32_0 = arith.constant 0 : i32
    %c0_i32_1 = arith.constant 0 : i32
    return %arg0, %c0_i32, %c0_i32_0 : i32, i32, i32
  }
  func.func @transform_2(%arg0: i32) -> (i32, i32) {
    %c0_i32 = arith.constant 0 : i32
    %c0_i32_0 = arith.constant 0 : i32
    %c0_i32_1 = arith.constant 0 : i32
    return %c0_i32, %c0_i32_0 : i32, i32
  }
  func.func @transform_3(%arg0: i32) -> (i32, i32) {
    %c0_i32 = arith.constant 0 : i32
    %c0_i32_0 = arith.constant 0 : i32
    %c0_i32_1 = arith.constant 0 : i32
    return %c0_i32, %c0_i32_0 : i32, i32
  }
  func.func @transform_4(%arg0: i32) -> (i32, i32) {
    %c0_i32 = arith.constant 0 : i32
    %c0_i32_0 = arith.constant 0 : i32
    %c0_i32_1 = arith.constant 0 : i32
    return %c0_i32, %c0_i32_0 : i32, i32
  }
  func.func @transform_5(%arg0: i32) -> (i32, i32) {
    %c0_i32 = arith.constant 0 : i32
    %c0_i32_0 = arith.constant 0 : i32
    %c0_i32_1 = arith.constant 0 : i32
    return %c0_i32, %c0_i32_0 : i32, i32
  }
  func.func @transform_6(%arg0: i32) -> (i32, i32) {
    %c0_i32 = arith.constant 0 : i32
    %c0_i32_0 = arith.constant 0 : i32
    %c0_i32_1 = arith.constant 0 : i32
    return %c0_i32, %c0_i32_0 : i32, i32
  }
  func.func @transform_7(%arg0: i32) -> (i32, i32) {
    %c0_i32 = arith.constant 0 : i32
    %c0_i32_0 = arith.constant 0 : i32
    %c0_i32_1 = arith.constant 0 : i32
    return %c0_i32, %c0_i32_0 : i32, i32
  }
  func.func @transform_8(%arg0: i32) -> (i32, i32) {
    %c0_i32 = arith.constant 0 : i32
    %c0_i32_0 = arith.constant 0 : i32
    %c0_i32_1 = arith.constant 0 : i32
    return %c0_i32, %c0_i32_0 : i32, i32
  }
  func.func @transform_9(%arg0: i32) -> (i32, i32, i32) {
    %c0_i32 = arith.constant 0 : i32
    %c0_i32_0 = arith.constant 0 : i32
    %c0_i32_1 = arith.constant 0 : i32
    return %arg0, %c0_i32, %c0_i32_0 : i32, i32, i32
  }
}

</mosaic_0001>

<bundles_post_ra>
// kernel: tpu_custom_call.1
= control target key start
LH: loop header
LB: loop body
LE: loop exit
PB: predicated region body
PF: predicated region fallthrough
CT: control target
= control target key end

     0   :  { %14 = vsyncpa [#allocation3], 0  ;;  %s1509_s0 = inlined_call_operand.vmem [shape: bf16[4,16,8], index: 0, kind: input, shape index: {}]   ;;  %s1510_s1 = inlined_call_operand.vmem [shape: s8[4,16,16], index: 1, kind: input, shape index: {}]   ;;  %s1511_s2 = inlined_call_operand.vmem [shape: bf16[8,32], index: 2, kind: input, shape index: {}]   ;;  %s1512_s3 = inlined_call_operand.vmem [shape: bf16[32,128], index: 3, kind: input, shape index: {}]   ;;  %s1513_s4 = inlined_call_operand.vmem [shape: bf16[8,32], index: 4, kind: input, shape index: {}]   ;;  %s1514_s5 = inlined_call_operand.vmem [shape: bf16[128,32], index: 5, kind: input, shape index: {}]   ;;  %s1515_s6 = inlined_call_operand.vmem [shape: bf16[128,8], index: 6, kind: input, shape index: {}]   ;;  %s1516_s7 = inlined_call_operand.vmem [shape: f32[8,32], index: 7, kind: input, shape index: {}]   ;;  %s1517_s8 = inlined_call_operand.vmem [shape: f32[1,32], index: 8, kind: input, shape index: {}]   ;;  %s1518_s9 = inlined_call_operand.hbm [shape: f32[4,16,32], index: 9, kind: output, shape index: {}]  }
   0x1   :  { %16 = vsyncpa [#allocation3 + $0x1], 0  ;;  %s1239_s30 = smov 0   ;;  %s1241_s10 = smov 0  }
   0x2   :  { %s1243_s11 = smov 0   ;;  %s1245_s12 = smov 0  }
   0x3 LB: > { %s1260_s13 = sadd.s32 4294967295, %s1178_s12   ;;  %s937_s14 = sadd.s32 4294967294, %s1178_s12   ;;  %s1178_s12 = sphi %s1245_s12, %s1524_s12   ;;  %s1174_s11 = sphi %s1243_s11, %s1523_s11   ;;  %s1170_s10 = sphi %s1241_s10, %s1522_s10   ;;  %s1166_s30 = sphi %s1239_s30, %s1521_s30  }
   0x4   : > { %s1264_s15 = sadd.s32 1, %s1178_s12   ;;  %s228_s16 = sadd.s32 1, %s1174_s11 }
   0x5   : > { %s225_s17 = ssub.s32 %s1178_s12, %s1264_s15  ;;  %p238_p0 = scmp.ne.s32.totalorder %s1174_s11, %s1170_s10 }
   0x6   : > { %p226_p1 = scmp.eq.s32.totalorder %s225_s17, 0  ;;  %p239_p2 = scmp.eq.s32.totalorder %s1260_s13, 3 }
   0x7   : > { %p244_p3 = scmp.ne.s32.totalorder %s1170_s10, %s1166_s30  ;;  %p245_p4 = scmp.eq.s32.totalorder %s937_s14, 3 }
   0x8   : > { %s1275_s18 = scalar_select %p226_p1, %s1174_s11, %s228_s16  }
   0x9   : > { %p1277_p5 = por %p239_p2, %p238_p0  ;;  %p1281_p6 = por %p245_p4, %p244_p3 }
   0xa   : > { %p940_p7 = scmp.ge.s32.totalorder %s1178_s12, 1  ;;  %p300_p8 = scmp.lt.s32.totalorder %s1178_s12, 5 }
   0xc   : > { %p301_p9 = pnand %p940_p7, %p300_p8 }
   0xd   : > { %p341_p10 = scmp.lt.s32.totalorder (!%p301_p9), %s1260_s13, 3  ;;  %s1180_s17 = smov (!%p301_p9), 16  }
   0xe   : > { %304 = sbr.rel (%p301_p9) target bundleno = 977 (0x3d1), region = 56  ;;  %s1181_s21 = smov (!%p301_p9), 32  }
   0xf   : > { %s1182_s22 = smov (!%p301_p9), 48  }
  0x13   : > { %v354_v0 = vld [vmem:[%s1511_s2] sm:$0xf]  ;;  %vm364_vm0 = vcmask 1043456   ;;  %s342_s23 = scalar_select %p341_p10, %s1260_s13, 3  ;;  %vm360_vm1 = vcmask 64512   ;;  %v1006_v12 = vld [vmem:[%s1512_s3 + $0x8] sm:$0xff] }
  0x14   : > { %v366_v1 = vsel %vm364_vm0, %v354_v0, 0  ;;  %475 = vmatpush.bf16.msra.mxu2 %v1006_v12  ;;  %v1005_v13 = vld [vmem:[%s1512_s3] sm:$0xff]  ;;  %vm394_vm2 = vcmask 261120   ;;  %v1012_v32 = vld [vmem:[%s1515_s6 + $0x28] sm:$0xff]  ;;  %v1013_v33 = vld [vmem:[%s1515_s6 + $0x30] sm:$0xff]  ;;  %vm443_vm3 = vcmask 130048  }
  0x15   : > { %375 = vmatpush.bf16.msra.mxu0 %v366_v1  ;;  %s1002_s24 = sshll.u32 %s342_s23, 3  ;;  %s1003_s25 = sshll.u32 %s342_s23, 2  ;;  %v388_v22 = vld [vmem:[%s1513_s4] sm:$0xf]  ;;  %v1014_v34 = vld [vmem:[%s1515_s6 + $0x38] sm:$0xff]  ;;  %v1009_v37 = vld [vmem:[%s1515_s6 + $0x10] sm:$0xff] }
  0x16   : > { %s345_s28 = scalar_lea.vmem %s1509_s0, %s1002_s24  ;;  %s350_s16 = scalar_lea.vmem %s1510_s1, %s1003_s25  ;;  %v1010_v35 = vld [vmem:[%s1515_s6 + $0x18] sm:$0xff]  ;;  %v1011_v36 = vld [vmem:[%s1515_s6 + $0x20] sm:$0xff]  ;;  %v1008_v38 = vld [vmem:[%s1515_s6 + $0x8] sm:$0xff]  ;;  %vm446_vm4 = vcmask 392192   ;;  %vm448_vm5 = vcmask 523264   ;;  %vm450_vm6 = vcmask 654336  }
  0x17   : > { %v1004_v2 = vld [vmem:[%s345_s28] sm:$0xff]  ;;  %s1183_s23 = smov 64   ;;  %s1184_s24 = smov 80   ;;  %v1054_v61 = vld [vmem:[%s1514_s5 + $0x38] sm:$0xff]   ;;  %vm454_vm7 = vcmask 916480   ;;  %vm452_vm8 = vcmask 785408  }
  0x18   : > { %950 = vmatmul.msk.bf16.vlgmr.msra.gmra.mxu0 %vm360_vm1, %v1004_v2  ;;  %v1056_v3 = vld [vmem:[%s350_s16] sm:$0xf]   ;;  %476 = vmatpush.bf16.msra.mxu2 %v1005_v13  ;;  %s1185_s16 = smov 96   ;;  %v1046_v1 = vunpack.c.l.bf16 %v1054_v61  ;;  %v1053_v2 = vld [vmem:[%s1514_s5 + $0x30] sm:$0xff]   ;;  %s338_s25 = sand.u32 1, %s1170_s10  }
  0x19   : > { %v1057_v4 = vunpack.c.0.s8 %v1056_v3  ;;  %v1058_v5 = vunpack.c.1.s8 %v1056_v3  ;;  %v1007_v39 = vld [vmem:[%s1515_s6] sm:$0xff]  ;;  %v1042_v13 = vunpack.c.l.bf16 %v1053_v2  ;;  %s941_s26 = sshll.u32 %s338_s25, 4 }
  0x1b   : > { %v491_v6 = vcvt.s32.f32 %v1057_v4  ;;  %v492_v7 = vcvt.s32.f32 %v1058_v5 }
  0x1d   : > { %v961_v8 = vadd.f32 -1.0, %v491_v6  ;;  %v962_v9 = vadd.f32 -1.0, %v492_v7  ;;  %v1047_v7 = vunpack.c.h.bf16 %v1054_v61  ;;  %v1049_v61 = vld [vmem:[%s1514_s5 + $0x10] sm:$0xff]  }
  0x1f   : > { %v1299_v10 = vmul.f32 1e+30, %v961_v8  ;;  %v1301_v11 = vmul.f32 1e+30, %v962_v9 }
  0x21   : > { %499 = vrot.lane.b32.xlu1 %v1299_v10, %s1180_s17  ;;  %505 = vrot.lane.b32.xlu0 %v1299_v10, %s1181_s21 }
  0x22   : > { %501 = vrot.lane.b32.xlu2 %v1301_v11, %s1180_s17 }
  0x29   : > { %507 = vrot.lane.b32.xlu1 %v1301_v11, %s1181_s21  ;;  %513 = vrot.lane.b32.xlu0 %v1301_v11, %s1182_s22 }
  0x2a   : > { %511 = vrot.lane.b32.xlu2 %v1299_v10, %s1182_s22 }
  0x31   : > { %517 = vrot.lane.b32.xlu1 %v1299_v10, %s1183_s23  ;;  %523 = vrot.lane.b32.xlu0 %v1299_v10, %s1184_s24 }
  0x32   : > { %519 = vrot.lane.b32.xlu2 %v1301_v11, %s1183_s23 }
  0x7c   : > { %v502_v40 = vpop.permute.xlu2 %501 }
  0x7d   : > { %v542_v0 = vsel %vm443_vm3, %v1301_v11, %v502_v40 }
  0x84   : > { %v512_v43 = vpop.permute.xlu2 %511 }
  0x8c   : > { %v520_v46 = vpop.permute.xlu2 %519 }
  0x93   : > { %v500_v41 = vpop.permute.xlu1 %499  ;;  %v506_v42 = vpop.permute.xlu0 %505 }
  0x94   : > { %v541_v58 = vsel %vm443_vm3, %v1299_v10, %v500_v41 }
  0x95   : > { %v377_v14 = vpop.f32.mrf.mxu0  ;;  %v543_v62 = vsel %vm394_vm2, %v541_v58, %v506_v42 }
  0x96   : > { %v382_v15 = vpack.c.bf16 %v377_v14, %v377_v14  ;;  %v545_v8 = vsel %vm446_vm4, %v543_v62, %v512_v43 }
  0x98   : > { %v391_v18 = vunpack.c.l.b16 %v382_v15  ;;  %v1043_v15 = vunpack.c.h.bf16 %v1053_v2 }
  0x9b   : > { %v508_v44 = vpop.permute.xlu1 %507  ;;  %v514_v45 = vpop.permute.xlu0 %513 }
  0x9d   : > { %v379_v16 = vpop.f32.mrf.mxu0 }
  0x9e   : > { %v383_v17 = vpack.c.bf16 %v379_v16, %v379_v16  ;;  %v1052_v16 = vld [vmem:[%s1514_s5 + $0x28] sm:$0xff]  }
  0xa0   : > { %v392_v19 = vunpack.c.l.b16 %v383_v17 }
  0xa2   : > { %v1327_v20 = vpack.c.b16 %v392_v19, %v391_v18 }
  0xa3   : > { %v518_v47 = vpop.permute.xlu1 %517  ;;  %v524_v48 = vpop.permute.xlu0 %523 }
  0xa4   : > { %960 = vmatmul.msk.bf16.vlgmr.msra.gmra.mxu2 %vm394_vm2, %v1327_v20  ;;  %v399_v21 = vsel %vm394_vm2, %v1327_v20, 0  ;;  %v1397_v3 = vunpack.c.l.bf16 %v1327_v20  ;;  %v1400_v4 = vunpack.c.h.bf16 %v1327_v20  ;;  %v547_v18 = vsel %vm448_vm5, %v545_v8, %v518_v47 }
  0xa5   : > { %408 = vmatpush.bf16.xpose.msra.mxu1 %v399_v21 }
  0xa6   : > { %v617_v19 = vmul.f32 %v1046_v1, %v1397_v3  ;;  %v618_v20 = vmul.f32 %v1047_v7, %v1400_v4  ;;  %v1026_v7 = vunpack.c.l.bf16 %v1049_v61 }
  0xac   : > { %951 = vmatmul.msk.bf16.vlgmr.msra.gmra.mxu1 %vm394_vm2, %v388_v22 }
 0x127   : > { %v478_v56 = vpop.f32.mrf.mxu2 }
 0x129   : > { %v410_v23 = vpop.f32.mrf.mxu1 }
 0x12a   : > { %v431_v24 = vrot.slane %v410_v23, 5  ;;  %v423_v25 = vrot.slane %v410_v23, 3  ;;  %v415_v26 = vrot.slane %v410_v23, 1  ;;  %v435_v28 = vrot.slane %v410_v23, 6 }
 0x12b   : > { %v427_v29 = vrot.slane %v410_v23, 4  ;;  %v419_v30 = vrot.slane %v410_v23, 2  ;;  %v439_v31 = vrot.slane %v410_v23, 7 }
 0x12c   : > { %432 = vrot.lane.b32.xlu2 %v431_v24, %s1184_s24  ;;  %424 = vrot.lane.b32.xlu1 %v423_v25, %s1182_s22  ;;  %s1186_s22 = smov 112   ;;  %v615_v24 = vmul.f32 %v1042_v13, %v1397_v3  ;;  %v1038_v25 = vunpack.c.l.bf16 %v1052_v16 }
 0x12d   : > { %416 = vrot.lane.b32.xlu0 %v415_v26, %s1180_s17  ;;  %v1039_v26 = vunpack.c.h.bf16 %v1052_v16  ;;  %v1027_v16 = vunpack.c.h.bf16 %v1049_v61 }
 0x12f   : > { %v480_v17 = vpop.f32.mrf.mxu2 }
 0x131   : > { %v412_v27 = vpop.f32.mrf.mxu1 }
 0x132   : > { %v549_v27 = vsel %vm450_vm6, %v547_v18, %v524_v48 }
 0x134   : > { %436 = vrot.lane.b32.xlu2 %v435_v28, %s1185_s16  ;;  %428 = vrot.lane.b32.xlu1 %v427_v29, %s1183_s23  ;;  %s848_s23 = scalar_lea.sflag [#allocation3], %s338_s25 }
 0x135   : > { %420 = vrot.lane.b32.xlu0 %v419_v30, %s1181_s21  ;;  %v616_v30 = vmul.f32 %v1043_v15, %v1400_v4 }
 0x13c   : > { %529 = vrot.lane.b32.xlu2 %v1299_v10, %s1185_s16  ;;  %525 = vrot.lane.b32.xlu1 %v1301_v11, %s1184_s24  ;;  %s340_s24 = scalar_lea.vmem [#allocation2], %s941_s26 }
 0x13d   : > { %440 = vrot.lane.b32.xlu0 %v439_v31, %s1186_s22  ;;  %v1051_v31 = vld [vmem:[%s1514_s5 + $0x20] sm:$0xff]  }
 0x13e   : > { %v1035_v47 = vunpack.c.h.bf16 %v1051_v31 }
 0x144   : > { %537 = vrot.lane.b32.xlu2 %v1301_v11, %s1186_s22  ;;  %535 = vrot.lane.b32.xlu1 %v1299_v10, %s1186_s22  ;;  %s860_s22 = sshll.u32 %s340_s24, 4  ;;  %s861_s22 = int_to_ptr.vmem [resolvable:$true] %s860_s22 }
 0x145   : > { %531 = vrot.lane.b32.xlu0 %v1301_v11, %s1185_s16  ;;  %v544_v11 = vsel %vm394_vm2, %v542_v0, %v508_v44  ;;  %v613_v44 = vmul.f32 %v1038_v25, %v1397_v3 }
 0x146   : > { %v546_v21 = vsel %vm446_vm4, %v544_v11, %v514_v45  ;;  %v1034_v45 = vunpack.c.l.bf16 %v1051_v31 }
 0x14c   : > { %741 = vrot.lane.b32.xlu2 %v1012_v32, %s1181_s21  ;;  %743 = vrot.lane.b32.xlu1 %v1013_v33, %s1181_s21  ;;  %v548_v33 = vsel %vm448_vm5, %v546_v21, %v520_v46 }
 0x14d   : > { %745 = vrot.lane.b32.xlu0 %v1014_v34, %s1181_s21 }
 0x154   : > { %737 = vrot.lane.b32.xlu1 %v1010_v35, %s1181_s21  ;;  %v633_v35 = vpack.c.bf16 %v617_v19, %v617_v19 }
 0x155   : > { %739 = vrot.lane.b32.xlu0 %v1011_v36, %s1181_s21  ;;  %v634_v36 = vpack.c.bf16 %v618_v20, %v618_v20 }
 0x15c   : > { %735 = vrot.lane.b32.xlu1 %v1009_v37, %s1181_s21 }
 0x164   : > { %733 = vrot.lane.b32.xlu1 %v1008_v38, %s1181_s21 }
 0x16c   : > { %731 = vrot.lane.b32.xlu1 %v1007_v39, %s1181_s21  ;;  %s1015_s21 = sshll.u32 %s1260_s13, 4 }
 0x16d   : > { %s859_s14 = scalar_lea.hbm %s1518_s9, %s1015_s21  ;;  %s1136_s21 = scalar_lea.hbm %s1518_s9, 64 }
 0x16e   : > { %s862_s17 = sshll.u32 %s859_s14, 4  ;;  %s863_s17 = int_to_ptr.hbm [resolvable:$true] %s862_s17 }
 0x16f   : > { %s1130_s13 = sshra.s32 %s863_s17, 4  ;;  %s1131_s13 = int_to_ptr.hbm [resolvable:$true] %s1130_s13 }
 0x170   : > { %s1132_s26 = scalar_lea.hbm %s1131_s13, 16  ;;  %p1137_p0 = scmp.lt.s32.totalorder %s1131_s13, %s1518_s9 }
 0x171   : > { %p1133_p11 = scmp.ne.s32.totalorder %s1131_s13, %s1132_s26  ;;  %p1138_p1 = scmp.lt.s32.totalorder %s1136_s21, %s1132_s26 }
 0x173   : > { %p1134_p12 = pnand %p1133_p11, %p1277_p5  ;;  %p1139_p2 = por %p1138_p1, %p1137_p0 }
 0x175   : > { %p1135_p13 = pneg %p1134_p12 }
 0x177   : > { %p1140_p3 = pnand %p1139_p2, %p1135_p13 }
 0x186   : > { %v433_v49 = vpop.permute.xlu2 %432 }
 0x18e   : > { %v437_v52 = vpop.permute.xlu2 %436 }
 0x196   : > { %v530_v5 = vpop.permute.xlu2 %529 }
 0x197   : > { %v551_v32 = vsel %vm452_vm8, %v549_v27, %v530_v5  ;;  %v607_v27 = vmul.f32 %v1026_v7, %v1397_v3 }
 0x19e   : > { %v425_v50 = vpop.permute.xlu1 %424  ;;  %v538_v42 = vpop.permute.xlu2 %537 }
 0x19f   : > { %v417_v51 = vpop.permute.xlu0 %416 }
 0x1a0   : > { %v444_v54 = vsel %vm443_vm3, %v410_v23, %v417_v51  ;;  %v1050_v51 = vld [vmem:[%s1514_s5 + $0x18] sm:$0xff]  }
 0x1a1   : > { %v1031_v2 = vunpack.c.h.bf16 %v1050_v51 }
 0x1a3   : > { %v610_v15 = vmul.f32 %v1031_v2, %v1400_v4 }
 0x1a6   : > { %v429_v53 = vpop.permute.xlu1 %428  ;;  %v742_v19 = vpop.permute.xlu2 %741 }
 0x1a7   : > { %v421_v55 = vpop.permute.xlu0 %420 }
 0x1a8   : > { %v445_v57 = vsel %vm394_vm2, %v444_v54, %v421_v55  ;;  %v682_v54 = vunpack.c.l.b16 %v634_v36  ;;  %v632_v55 = vpack.c.bf16 %v616_v30, %v616_v30  ;;  %v623_v36 = vpack.c.bf16 %v607_v27, %v607_v27 }
 0x1a9   : > { %v447_v59 = vsel %vm446_vm4, %v445_v57, %v425_v50  ;;  %v614_v50 = vmul.f32 %v1039_v26, %v1400_v4  ;;  %v629_v57 = vpack.c.bf16 %v613_v44, %v613_v44  ;;  %v626_v26 = vpack.c.bf16 %v610_v15, %v610_v15 }
 0x1aa   : > { %v449_v60 = vsel %vm448_vm5, %v447_v59, %v429_v53  ;;  %v681_v53 = vunpack.c.l.b16 %v633_v35  ;;  %v611_v59 = vmul.f32 %v1034_v45, %v1397_v3  ;;  %v680_v1 = vunpack.c.l.b16 %v632_v55 }
 0x1ab   : > { %v451_v63 = vsel %vm450_vm6, %v449_v60, %v433_v49  ;;  %v631_v49 = vpack.c.bf16 %v615_v24, %v615_v24  ;;  %v630_v58 = vpack.c.bf16 %v614_v50, %v614_v50  ;;  %v612_v60 = vmul.f32 %v1035_v47, %v1400_v4 }
 0x1ac   : > { %v453_v9 = vsel %vm452_vm8, %v451_v63, %v437_v52  ;;  %v690_v63 = vpack.c.b16 %v682_v54, %v681_v53  ;;  %v677_v8 = vunpack.c.l.b16 %v629_v57  ;;  %v674_v35 = vunpack.c.l.b16 %v626_v26 }
 0x1ad   : > { %v679_v0 = vunpack.c.l.b16 %v631_v49  ;;  %v628_v11 = vpack.c.bf16 %v612_v60, %v612_v60  ;;  %v671_v47 = vunpack.c.l.b16 %v623_v36 }
 0x1ae   : > { %v526_v6 = vpop.permute.xlu1 %525 }
 0x1af   : > { %v441_v10 = vpop.permute.xlu0 %440  ;;  %v550_v37 = vsel %vm450_vm6, %v548_v33, %v526_v6  ;;  %v689_v13 = vpack.c.b16 %v680_v1, %v679_v0 }
 0x1b0   : > { %v455_v12 = vsel %vm454_vm7, %v453_v9, %v441_v10  ;;  %v678_v9 = vunpack.c.l.b16 %v630_v58  ;;  %v627_v10 = vpack.c.bf16 %v611_v59, %v611_v59 }
 0x1b1   : > { %v456_v14 = vperm.slane %v455_v12, 0  ;;  %v1048_v12 = vld [vmem:[%s1514_s5 + $0x8] sm:$0xff]  }
 0x1b2   : > { %v1022_v18 = vunpack.c.l.bf16 %v1048_v12  ;;  %v688_v20 = vpack.c.b16 %v678_v9, %v677_v8  ;;  %v675_v21 = vunpack.c.l.b16 %v627_v10 }
 0x1b3   : > { %v479_v22 = vadd.f32 %v478_v56, %v456_v14  ;;  %v481_v23 = vadd.f32 %v480_v17, %v456_v14  ;;  %v1030_v56 = vunpack.c.l.bf16 %v1050_v51 }
 0x1b5   : > { %v483_v28 = vmul.f32 0.2, %v479_v22  ;;  %v484_v29 = vmul.f32 0.2, %v481_v23  ;;  %v609_v14 = vmul.f32 %v1030_v56, %v1397_v3 }
 0x1b6   : > { %v536_v34 = vpop.permute.xlu1 %535 }
 0x1b7   : > { %v553_v38 = vsel %vm454_vm7, %v551_v32, %v536_v34  ;;  %v532_v39 = vpop.permute.xlu0 %531  ;;  %v485_v40 = vmax.f32 %v479_v22, %v483_v28  ;;  %v486_v41 = vmax.f32 %v481_v23, %v484_v29  ;;  %v676_v22 = vunpack.c.l.b16 %v628_v11 }
 0x1b8   : > { %v552_v43 = vsel %vm452_vm8, %v550_v37, %v532_v39  ;;  %v1023_v23 = vunpack.c.h.bf16 %v1048_v12  ;;  %v625_v25 = vpack.c.bf16 %v609_v14, %v609_v14  ;;  %v608_v28 = vmul.f32 %v1027_v16, %v1400_v4  ;;  %v803_v12 = vld [vmem:[%s1516_s7] sm:$0xff] }
 0x1b9   : > { %v1425_v48 = vadd.f32 %v553_v38, %v485_v40  ;;  %v554_v46 = vsel %vm454_vm7, %v552_v43, %v538_v42  ;;  %v769_v29 = vsel %vm394_vm2, %v688_v20, %v742_v19  ;;  %v687_v31 = vpack.c.b16 %v676_v22, %v675_v21  ;;  %v1017_v38 = vld [vmem:[%s1514_s5] sm:$0xff]   ;;  %829 = vmatpush.msrb.mxu0 %v803_v12 }
 0x1ba   : > { %v1432_v52 = vadd.f32 %v554_v46, %v486_v41  ;;  %v605_v32 = vmul.f32 %v1022_v18, %v1397_v3  ;;  %v606_v33 = vmul.f32 %v1023_v23, %v1400_v4  ;;  %v673_v34 = vunpack.c.l.b16 %v625_v25  ;;  %v1107_v25 = vld [vmem:[%s1517_s8] ss:$0 sm:$0xff] }
 0x1bb   : > { %557 = vmax.xlane.f32.xlu2 %v1425_v48  ;;  %v624_v37 = vpack.c.bf16 %v608_v28, %v608_v28  ;;  %v1018_v42 = vunpack.c.l.bf16 %v1017_v38  ;;  %v1019_v43 = vunpack.c.h.bf16 %v1017_v38 }
 0x1bc   : > { %559 = vmax.xlane.f32.xlu0 %v1432_v52  ;;  %v621_v40 = vpack.c.bf16 %v605_v32, %v605_v32  ;;  %v622_v41 = vpack.c.bf16 %v606_v33, %v606_v33  ;;  %v686_v45 = vpack.c.b16 %v674_v35, %v673_v34 }
 0x1bd   : > { %v672_v46 = vunpack.c.l.b16 %v624_v37  ;;  %v603_v53 = vmul.f32 %v1018_v42, %v1397_v3  ;;  %v604_v54 = vmul.f32 %v1019_v43, %v1400_v4 }
 0x1be   : > { %v744_v62 = vpop.permute.xlu1 %743  ;;  %v669_v50 = vunpack.c.l.b16 %v621_v40  ;;  %v670_v51 = vunpack.c.l.b16 %v622_v41 }
 0x1bf   : > { %v746_v5 = vpop.permute.xlu0 %745  ;;  %v773_v17 = vsel %vm394_vm2, %v689_v13, %v744_v62  ;;  %v685_v55 = vpack.c.b16 %v672_v46, %v671_v47  ;;  %v619_v58 = vpack.c.bf16 %v603_v53, %v603_v53  ;;  %v620_v59 = vpack.c.bf16 %v604_v54, %v604_v54 }
 0x1c0   : > { %v777_v6 = vsel %vm394_vm2, %v690_v63, %v746_v5  ;;  %v684_v57 = vpack.c.b16 %v670_v51, %v669_v50 }
 0x1c1   : > { %779 = vmatpush.bf16.msra.mxu3 %v777_v6  ;;  %v667_v62 = vunpack.c.l.b16 %v619_v58  ;;  %v668_v63 = vunpack.c.l.b16 %v620_v59 }
 0x1c3   : > { %v683_v0 = vpack.c.b16 %v668_v63, %v667_v62 }
 0x1c5   : > { %780 = vmatpush.bf16.msra.mxu3 %v773_v17 }
 0x1c6   : > { %v738_v24 = vpop.permute.xlu1 %737 }
 0x1c7   : > { %v740_v30 = vpop.permute.xlu0 %739  ;;  %v761_v49 = vsel %vm394_vm2, %v686_v45, %v738_v24 }
 0x1c8   : > { %v765_v39 = vsel %vm394_vm2, %v687_v31, %v740_v30 }
 0x1c9   : > { %781 = vmatpush.bf16.msra.mxu3 %v769_v29 }
 0x1cd   : > { %782 = vmatpush.bf16.msra.mxu3 %v765_v39 }
 0x1ce   : > { %v736_v44 = vpop.permute.xlu1 %735 }
 0x1cf   : > { %v757_v56 = vsel %vm394_vm2, %v685_v55, %v736_v44 }
 0x1d1   : > { %783 = vmatpush.bf16.msra.mxu3 %v761_v49 }
 0x1d5   : > { %784 = vmatpush.bf16.msra.mxu3 %v757_v56 }
 0x1d6   : > { %v734_v60 = vpop.permute.xlu1 %733 }
 0x1d7   : > { %v753_v61 = vsel %vm394_vm2, %v684_v57, %v734_v60 }
 0x1d9   : > { %785 = vmatpush.bf16.msra.mxu3 %v753_v61 }
 0x1de   : > { %v732_v1 = vpop.permute.xlu1 %731 }
 0x1df   : > { %v749_v2 = vsel %vm394_vm2, %v683_v0, %v732_v1 }
 0x1e0   : > { %786 = vmatpush.bf16.msra.mxu3 %v749_v2 }
 0x22e   : > { %v558_v3 = vpop.xlane.xlu2 %557 }
 0x22f   : > { %v561_v4 = vsub.f32 %v1425_v48, %v558_v3  ;;  %v560_v5 = vpop.xlane.xlu0 %559 }
 0x230   : > { %v562_v6 = vsub.f32 %v1432_v52, %v560_v5 }
 0x231   : > { %v563_v7 = vmul.f32 1.442695, %v561_v4 }
 0x232   : > { %v565_v8 = vmul.f32 1.442695, %v562_v6 }
 0x233   : > { %1108 = vpow2.f32 %v563_v7 }
 0x234   : > { %1110 = vpow2.f32 %v565_v8 }
 0x239   : > { %v1109_v9 = vpop.eup %1108 }
 0x23a   : > { %v1111_v10 = vpop.eup %1110 }
 0x23b   : > { %v567_v11 = vpack.c.bf16 %v1111_v10, %v1109_v9 }
 0x23d   : > { %787 = vmatmul.bf16.vlgmr.msra.gmra.mxu3 %v567_v11 }
 0x2c0   : > { %v788_v13 = vpop.f32.mrf.mxu3 }
 0x2c1   : > { %v793_v14 = vmax.f32 %v788_v13, 1e-20 }
 0x2c3   : > { %1112 = vrcp.f32 %v793_v14 }
 0x2c8   : > { %v790_v48 = vpop.f32.mrf.mxu3 }
 0x2c9   : > { %v1113_v15 = vpop.eup %1112  ;;  %v794_v52 = vmax.f32 %v790_v48, 1e-20 }
 0x2ca   : > { %v797_v16 = vmul.f32 %v1113_v15, %v793_v14 }
 0x2cb   : > { %1114 = vrcp.f32 %v794_v52 }
 0x2cc   : > { %v799_v17 = vsub.f32 2.0, %v797_v16 }
 0x2ce   : > { %v801_v18 = vmul.f32 %v1113_v15, %v799_v17 }
 0x2d0   : > { %806 = vrot.lane.b32.xlu1 %v801_v18, %s1185_s16 }
 0x2d1   : > { %v1115_v19 = vpop.eup %1114 }
 0x2d2   : > { %v798_v20 = vmul.f32 %v1115_v19, %v794_v52 }
 0x2d4   : > { %v800_v21 = vsub.f32 2.0, %v798_v20 }
 0x2d6   : > { %v802_v22 = vmul.f32 %v1115_v19, %v800_v21 }
 0x2d8   : > { %808 = vrot.lane.b32.xlu1 %v802_v22, %s1185_s16 }
 0x342   : > { %v807_v23 = vpop.permute.xlu1 %806 }
 0x343   : > { %995 = vmatmul.msk.f32.vlgmr.msrb.gmra.mxu0 %vm360_vm1, %v807_v23 }
 0x34a   : > { %v809_v24 = vpop.permute.xlu1 %808 }
 0x34b   : > { %996 = vmatmul.msk.f32.gmra.mxu0 %vm360_vm1, %v809_v24 }
 0x3c0   : > { %v831_v26 = vpop.f32.mrf.mxu0 }
 0x3c1   : > { %v837_v27 = vmul.f32 %v831_v26, %v788_v13 }
 0x3c3   : > { %v843_v28 = vadd.f32 %v1107_v25, %v837_v27 }
 0x3c5   : > { %845 = vst.msk [vmem:[%s340_s24] sm:$0xff] %vm394_vm2, %v843_v28 }
 0x3c8   : > { %v834_v29 = vpop.f32.mrf.mxu0 }
 0x3c9   : > { %v838_v30 = vmul.f32 %v834_v29, %v790_v48 }
 0x3cb   : > { %v844_v31 = vadd.f32 %v1107_v25, %v838_v30 }
 0x3cd   : > { %846 = vst.msk [vmem:[%s340_s24 + $0x8] sm:$0xff] %vm394_vm2, %v844_v31 }
 0x3ce   : > { %1143 = shalt.err (!%p1140_p3)
}
 0x3cf   : > { %s1187_s25 = smov 128   ;;  %s1188_s24 = smov 8  }
 0x3d0   : > { %1059 = dma.vmem_to_hbm [thread:$0]  (%p1277_p5), %s861_s22, 256, %s863_s17, %s848_s23, %s1187_s25, %s1187_s25, %s1188_s24  }
 0x3d1 PF: > { %p1065_p4 = scmp.ge.s32.totalorder %s1178_s12, 2  ;;  %s877_s14 = sand.u32 1, %s1166_s30  }
 0x3d2   : > { %s878_s27 = scalar_lea.sflag [#allocation3], %s877_s14 }
 0x3d3   : > { %p1062_p7 = pnand %p1065_p4, %p1281_p6 }
 0x3d5   : > { %p1063_p8 = pneg %p1062_p7 }
 0x3d7   : > { %1161 = dma.done.wait (%p1063_p8), %s878_s27, 256  }
 0x3d8   : > { %1163 = vsyncadd (%p1063_p8), %s878_s27, 4294967040  ;;  %p19_p9 = scmp.ge.s32.totalorder %s1264_s15, 6   ;;  %s1521_s30 = smov %s1170_s10 }
 0x3d9   : > { %s1522_s10 = smov %s1174_s11  ;;  %s1523_s11 = smov %s1275_s18 }
 0x3da   : > { %s1524_s12 = smov %s1264_s15  ;;  %21 = sbr.rel (!%p19_p9) target bundleno = 3 (0x3), region = 94 }
 0x3df   :  { %884 = vsyncpa [#allocation3], 1 }
 0x3e0   :  { %886 = vsyncpa [#allocation3 + $0x1], 1 }

</bundles_post_ra>
